<compile_context>
chip_gen: v7x
topology: tpu7x:2x2x1
jax: 0.10.0
libtpu: 0.0.40
codegen_flags: <defaults>
</compile_context>

<pallas_src>
import functools
import random

import jax
import jax.numpy as jnp
from jax import lax
from jax.experimental import pallas as pl
from jax.experimental.pallas import tpu as pltpu

# ---------------- synthetic model dimensions (small, TPU-tile aligned) -------
GRID = 4                              # adaptive-pool grid (stand-in for 224 resize)
CHANNELS = 3
IN_FEAT = CHANNELS * GRID * GRID      # 48 raw pooled features per image
K_PAD = 128                           # zero-padded contraction dim (aligned MXU K)
FEAT_DIM = 64                         # synthetic CLIP embedding dim (real: 512)
D_PAD = 128                           # lane-dense padded feature dim
NUM_TEMPLATES = 27                    # len(imagenet_templates_small)
NUM_PATCHES = 12
PATCH_SIZE_FLOOR = 16                 # small-scale stand-in for the hard-coded 224
TDIR_ROWS = 8                         # text direction padded to 8 sublane rows


# ============================ fused Pallas kernel ============================

def _make_fused_kernel(batch, num_patches):
    """Kernel closure over static problem sizes (Python ints only).

    Inputs (fp32, zero-padded):
      x_ref    : [rows_pad, K_PAD]  pooled pixels, rows = [src(B); tgt(B); patches(P*B); pad]
      w_ref    : [K_PAD, D_PAD]     encoder projection (zero-padded)
      tdir_ref : [8, D_PAD]         precomputed unit-norm text direction in row 0, rest zero
    Output:
      o_ref    : [1, 1]             directional loss (full-image pass + patch pass)
    """
    B = batch
    P = num_patches

    def kernel(x_ref, w_ref, tdir_ref, o_ref):
        # ---- encode every image at once: single bf16 MXU matmul, f32 accumulate ----
        feat = jnp.dot(x_ref[...].astype(jnp.bfloat16),
                       w_ref[...].astype(jnp.bfloat16),
                       preferred_element_type=jnp.float32)
        # L2 normalize (EUP rsqrt; 1e-12 clamp keeps padded zero rows NaN-free)
        feat = feat * lax.rsqrt(
            jnp.maximum(jnp.sum(feat * feat, axis=-1, keepdims=True), 1e-12))

        src = feat[0:B, :]                       # [B, D_PAD]
        rest = feat[B:(2 + P) * B, :]            # [(1+P)*B, D_PAD]  = [tgt; patches]

        # ---- fused edit directions: broadcast subtraction (no concatenate) ----
        if B == 1:
            edits = rest - src                   # src broadcasts over all rows
        else:
            edits = (rest.reshape(1 + P, B, D_PAD)
                     - src.reshape(1, B, D_PAD)).reshape((1 + P) * B, D_PAD)
        edits = edits * lax.rsqrt(
            jnp.maximum(jnp.sum(edits * edits, axis=-1, keepdims=True), 1e-12))

        # ---- all cosines in one MXU pass: edits @ tdir^T (rows 1..7 of tdir are 0) ----
        cos_all = lax.dot_general(
            edits, tdir_ref[...],
            dimension_numbers=(((1,), (1,)), ((), ())),
            preferred_element_type=jnp.float32)          # [(1+P)*B, 8]
        one_minus = 1.0 - cos_all[:, 0:1]                # [(1+P)*B, 1]

        # ---- per-pass means (keepdims: stays vector-shaped until the store) ----
        loss_full = jnp.sum(one_minus[0:B, :], axis=0, keepdims=True) * (1.0 / B)
        loss_patch = jnp.sum(one_minus[B:(1 + P) * B, :], axis=0,
                             keepdims=True) * (1.0 / (P * B))
        o_ref[...] = loss_full + loss_patch

    return kernel


# ================================ host glue =================================

def adaptive_pool_flatten(img_nchw, grid=GRID):
    """Stand-in for Resize(224) + patch embedding: adaptive avg-pool to a
    grid x grid map per channel, flattened to [B, C*grid*grid]."""
    B, C, H, W = img_nchw.shape
    assert H % grid == 0 and W % grid == 0
    x = img_nchw.reshape(B, C, grid, H // grid, grid, W // grid)
    x = x.mean(axis=(3, 5))
    return x.reshape(B, C * grid * grid).astype(jnp.float32)


def _pad2(x, rows, cols):
    r, c = x.shape
    return jnp.pad(x, ((0, rows - r), (0, cols - c)))


@functools.lru_cache(maxsize=None)
def synth_text_features(class_str):
    """Deterministic stand-in for encode_text over the 27 template prompts."""
    seed = sum(ord(c) for c in class_str) % (2 ** 31)
    key = jax.random.PRNGKey(seed)
    feats = jax.random.normal(key, (NUM_TEMPLATES, FEAT_DIM), jnp.float32)
    feats = feats / jnp.linalg.norm(feats, axis=-1, keepdims=True)
    return feats


@functools.lru_cache(maxsize=None)
def text_direction(source_class, target_class):
    """compute_text_direction, precomputed once per class pair (mirrors the
    module's lazy self.text_direction cache). Returns unit-norm direction padded
    to [TDIR_ROWS, D_PAD] with the direction in row 0."""
    src = synth_text_features(source_class)
    tgt = synth_text_features(target_class)
    tdir = jnp.mean(tgt - src, axis=0, keepdims=True)        # [1, FEAT_DIM]
    tdir = tdir / jnp.linalg.norm(tdir, axis=-1, keepdims=True)
    out = jnp.zeros((TDIR_ROWS, D_PAD), jnp.float32)
    return out.at[0:1, 0:FEAT_DIM].set(tdir)


@functools.partial(jax.jit, static_argnums=(4, 5))
def _forward_jit(src_img, target_img, w_proj, tdir_pad, patch_offsets, size):
    """Patch slicing + pooling + padding + the fused Pallas kernel, one XLA program."""
    B = src_img.shape[0]

    patches = jnp.concatenate(
        [target_img[:, :, x:x + size, y:y + size] for (x, y) in patch_offsets],
        axis=0)                                               # [P*B, C, size, size]

    pooled = jnp.concatenate([
        adaptive_pool_flatten(src_img),
        adaptive_pool_flatten(target_img),
        adaptive_pool_flatten(patches),
    ], axis=0)                                                # [(2+P)*B, IN_FEAT]
    n_rows = pooled.shape[0]
    rows_pad = ((n_rows + 7) // 8) * 8
    pooled = _pad2(pooled, rows_pad, K_PAD)
    w_pad = _pad2(w_proj.astype(jnp.float32), K_PAD, D_PAD)

    kernel = _make_fused_kernel(B, NUM_PATCHES)
    vmem = pl.BlockSpec(memory_space=pltpu.MemorySpace.VMEM)
    out = pl.pallas_call(
        kernel,
        out_shape=jax.ShapeDtypeStruct((1, 1), jnp.float32),
        in_specs=[vmem, vmem, vmem],
        out_specs=vmem,
    )(pooled, w_pad, tdir_pad)
    return out[0, 0]


def clip_loss_forward(src_img, source_class, target_img, target_class, w_proj):
    """CLIPLoss.forward with direction_loss_type='cosine' (single fused kernel)."""
    H, W = target_img.shape[-2], target_img.shape[-1]
    # same crop-size logic as the original, with a small-scale size floor and a
    # seeded RNG for deterministic patch offsets (static under jit)
    size = max(PATCH_SIZE_FLOOR, min(src_img.shape[-1], src_img.shape[-2]))
    random.seed(0)
    offsets = tuple(
        (random.randint(0, H - size), random.randint(0, W - size))
        for _ in range(NUM_PATCHES))

    tdir_pad = text_direction(source_class, target_class)
    return _forward_jit(src_img, target_img, w_proj, tdir_pad, offsets, size)


# ================================== main ====================================

if __name__ == "__main__":
    key = jax.random.PRNGKey(0)
    k_src, k_tgt, k_w = jax.random.split(key, 3)

    B, C, H, W = 1, CHANNELS, 24, 48                 # small NCHW images
    src_img = jax.random.uniform(k_src, (B, C, H, W), jnp.float32)
    target_img = jax.random.uniform(k_tgt, (B, C, H, W), jnp.float32)

    # deterministic synthetic "encoder" projection weight
    w_proj = 0.1 * jax.random.normal(k_w, (IN_FEAT, FEAT_DIM), jnp.float32)

    loss = clip_loss_forward(src_img, "photo", target_img, "sketch", w_proj)
    loss = jax.block_until_ready(loss)
    assert loss.shape == () and bool(jnp.isfinite(loss))
    print("KERNEL_OK")
</pallas_src>

<mosaic_0001>
module attributes {stable_mosaic.version = 11 : i64} {
  func.func @kernel(%arg0: memref<16x128xf32, #tpu.memory_space<vmem>>, %arg1: memref<128x128xf32, #tpu.memory_space<vmem>>, %arg2: memref<8x128xf32, #tpu.memory_space<vmem>>, %arg3: memref<1x1xf32, #tpu.memory_space<vmem>>) attributes {dimension_semantics = [], scalar_prefetch = 0 : i64, scratch_operands = 0 : i64, tpu.core_type = #tpu.core_type<tc>} {
    %c0 = arith.constant 0 : index
    %c0_0 = arith.constant 0 : index
    %0 = vector.load %arg0[%c0, %c0_0] : memref<16x128xf32, #tpu.memory_space<vmem>>, vector<16x128xf32>
    %1 = arith.truncf %0 : vector<16x128xf32> to vector<16x128xbf16>
    %c0_1 = arith.constant 0 : index
    %c0_2 = arith.constant 0 : index
    %2 = vector.load %arg1[%c0_1, %c0_2] : memref<128x128xf32, #tpu.memory_space<vmem>>, vector<128x128xf32>
    %3 = arith.truncf %2 : vector<128x128xf32> to vector<128x128xbf16>
    %cst = arith.constant dense<0.000000e+00> : vector<16x128xf32>
    %4 = tpu.matmul %1, %3, %cst {dimension_numbers = #tpu.dot_dimension_numbers<[1], [0], [0], [1], [0, 0, 1, 1], [], []>} : vector<16x128xbf16>, vector<128x128xbf16>, vector<16x128xf32> -> vector<16x128xf32>
    %5 = arith.mulf %4, %4 : vector<16x128xf32>
    %cst_3 = arith.constant dense<0.000000e+00> : vector<16xf32>
    %6 = vector.multi_reduction <add>, %5, %cst_3 [1] : vector<16x128xf32> to vector<16xf32>
    %7 = vector.shape_cast %6 : vector<16xf32> to vector<16x1xf32>
    %cst_4 = arith.constant 9.99999996E-13 : f32
    %8 = vector.broadcast %cst_4 : f32 to vector<16x1xf32>
    %9 = arith.maximumf %7, %8 : vector<16x1xf32>
    %10 = math.rsqrt %9 : vector<16x1xf32>
    %11 = vector.broadcast %10 : vector<16x1xf32> to vector<16x128xf32>
    %12 = arith.mulf %4, %11 : vector<16x128xf32>
    %13 = vector.extract_strided_slice %12 {offsets = [0, 0], sizes = [1, 128], strides = [1, 1]} : vector<16x128xf32> to vector<1x128xf32>
    %14 = vector.extract_strided_slice %12 {offsets = [1, 0], sizes = [13, 128], strides = [1, 1]} : vector<16x128xf32> to vector<13x128xf32>
    %15 = vector.broadcast %13 : vector<1x128xf32> to vector<13x128xf32>
    %16 = arith.subf %14, %15 : vector<13x128xf32>
    %17 = arith.mulf %16, %16 : vector<13x128xf32>
    %cst_5 = arith.constant dense<0.000000e+00> : vector<13xf32>
    %18 = vector.multi_reduction <add>, %17, %cst_5 [1] : vector<13x128xf32> to vector<13xf32>
    %19 = vector.shape_cast %18 : vector<13xf32> to vector<13x1xf32>
    %cst_6 = arith.constant 9.99999996E-13 : f32
    %20 = vector.broadcast %cst_6 : f32 to vector<13x1xf32>
    %21 = arith.maximumf %19, %20 : vector<13x1xf32>
    %22 = math.rsqrt %21 : vector<13x1xf32>
    %23 = vector.broadcast %22 : vector<13x1xf32> to vector<13x128xf32>
    %24 = arith.mulf %16, %23 : vector<13x128xf32>
    %c0_7 = arith.constant 0 : index
    %c0_8 = arith.constant 0 : index
    %25 = vector.load %arg2[%c0_7, %c0_8] : memref<8x128xf32, #tpu.memory_space<vmem>>, vector<8x128xf32>
    %cst_9 = arith.constant dense<0.000000e+00> : vector<13x8xf32>
    %26 = tpu.matmul %24, %25, %cst_9 {dimension_numbers = #tpu.dot_dimension_numbers<[1], [1], [0], [0], [0, 0, 1, 0], [], []>} : vector<13x128xf32>, vector<8x128xf32>, vector<13x8xf32> -> vector<13x8xf32>
    %27 = vector.extract_strided_slice %26 {offsets = [0, 0], sizes = [13, 1], strides = [1, 1]} : vector<13x8xf32> to vector<13x1xf32>
    %cst_10 = arith.constant 1.000000e+00 : f32
    %28 = vector.broadcast %cst_10 : f32 to vector<13x1xf32>
    %29 = arith.subf %28, %27 : vector<13x1xf32>
    %30 = vector.extract_strided_slice %29 {offsets = [0, 0], sizes = [1, 1], strides = [1, 1]} : vector<13x1xf32> to vector<1x1xf32>
    %cst_11 = arith.constant dense<0.000000e+00> : vector<1xf32>
    %31 = vector.multi_reduction <add>, %30, %cst_11 [0] : vector<1x1xf32> to vector<1xf32>
    %32 = vector.shape_cast %31 : vector<1xf32> to vector<1x1xf32>
    %cst_12 = arith.constant 1.000000e+00 : f32
    %33 = vector.broadcast %cst_12 : f32 to vector<1x1xf32>
    %34 = arith.mulf %32, %33 : vector<1x1xf32>
    %35 = vector.extract_strided_slice %29 {offsets = [1, 0], sizes = [12, 1], strides = [1, 1]} : vector<13x1xf32> to vector<12x1xf32>
    %cst_13 = arith.constant dense<0.000000e+00> : vector<1xf32>
    %36 = vector.multi_reduction <add>, %35, %cst_13 [0] : vector<12x1xf32> to vector<1xf32>
    %37 = vector.shape_cast %36 : vector<1xf32> to vector<1x1xf32>
    %cst_14 = arith.constant 0.0833333358 : f32
    %38 = vector.broadcast %cst_14 : f32 to vector<1x1xf32>
    %39 = arith.mulf %37, %38 : vector<1x1xf32>
    %40 = arith.addf %34, %39 : vector<1x1xf32>
    %c0_15 = arith.constant 0 : index
    %c0_16 = arith.constant 0 : index
    %41 = vector.load %arg3[%c0_15, %c0_16] : memref<1x1xf32, #tpu.memory_space<vmem>>, vector<1x1xf32>
    tpu.vector_store %arg3[%c0_15, %c0_16], %40 {strides = array<i32>} : memref<1x1xf32, #tpu.memory_space<vmem>>, vector<1x1xf32>,
    return
  }
}

</mosaic_0001>

<bundles_post_ra>
// kernel: _forward_jit.1
= control target key start
LH: loop header
LB: loop body
LE: loop exit
PB: predicated region body
PF: predicated region fallthrough
CT: control target
= control target key end

     0   :  { %v313_v3 = vmov 0.0   ;;  %vm314_vm0 = vmmov 0   ;;  %s405_s0 = inlined_call_operand.vmem [shape: f32[16,128], index: 0, kind: input, shape index: {}]   ;;  %s406_s1 = inlined_call_operand.vmem [shape: f32[128,128], index: 1, kind: input, shape index: {}]   ;;  %s407_s2 = inlined_call_operand.vmem [shape: f32[8,128], index: 2, kind: input, shape index: {}]   ;;  %s408_s3 = inlined_call_operand.hbm [shape: f32[1,1], index: 3, kind: output, shape index: {}]  }
   0x1   :  { %v19_v0 = vld [vmem:[%s406_s1] sm:$0xff]  ;;  %v20_v1 = vld [vmem:[%s406_s1 + $0x8] sm:$0xff]  ;;  %v21_v2 = vld [vmem:[%s406_s1 + $0x10] sm:$0xff]  ;;  %253 = vmatprep.subr.bf16.mxu0 %v313_v3  ;;  %269 = vmatprep.mubr.msk.bf16.mxu0 %vm314_vm0, %v313_v3 }
   0x2   :  { %v35_v4 = vpack.c.bf16 %v20_v1, %v19_v0  ;;  %v22_v5 = vld [vmem:[%s406_s1 + $0x18] sm:$0xff]  ;;  %v23_v7 = vld [vmem:[%s406_s1 + $0x20] sm:$0xff]  ;;  %v24_v8 = vld [vmem:[%s406_s1 + $0x28] sm:$0xff] }
   0x3   :  { %v36_v6 = vpack.c.bf16 %v22_v5, %v21_v2 }
   0x4   :  { %254 = vmatpush3.bf16.msra.mxu0 %v35_v4 }
   0x5   :  { %255 = vmatprep.subr.bf16.mxu0 %v313_v3 }
   0x6   :  { %8 = vsyncpa [#allocation3], 0  ;;  %v37_v9 = vpack.c.bf16 %v24_v8, %v23_v7  ;;  %v25_v10 = vld [vmem:[%s406_s1 + $0x30] sm:$0xff]  ;;  %v26_v11 = vld [vmem:[%s406_s1 + $0x38] sm:$0xff]  ;;  %v96_v37 = vlaneseq  ;;  %vm104_vm1 = vcmask 1047553   ;;  %vm108_vm2 = vcmask 1045504  }
   0x7   :  { %v38_v12 = vpack.c.bf16 %v26_v11, %v25_v10  ;;  %v27_v13 = vld [vmem:[%s406_s1 + $0x40] sm:$0xff]  ;;  %v28_v14 = vld [vmem:[%s406_s1 + $0x48] sm:$0xff]  ;;  %v29_v16 = vld [vmem:[%s406_s1 + $0x50] sm:$0xff]  ;;  %vm121_vm3 = vcmask 1046528   ;;  %vm214_vm4 = vcmask 3072   ;;  %vm212_vm5 = vcmask 7168  }
   0x8   :  { %256 = vmatpush3.bf16.msra.mxu0 %v36_v6  ;;  %v39_v15 = vpack.c.bf16 %v28_v14, %v27_v13  ;;  %v30_v17 = vld [vmem:[%s406_s1 + $0x58] sm:$0xff]  ;;  %v31_v19 = vld [vmem:[%s406_s1 + $0x60] sm:$0xff]  ;;  %v32_v20 = vld [vmem:[%s406_s1 + $0x68] sm:$0xff]  ;;  %v97_v39 = vshrl.u32 %v96_v37, 7  ;;  %vm225_vm6 = vcmask 0  }
   0x9   :  { %257 = vmatprep.subr.bf16.mxu0 %v313_v3  ;;  %v40_v18 = vpack.c.bf16 %v30_v17, %v29_v16  ;;  %v41_v21 = vpack.c.bf16 %v32_v20, %v31_v19  ;;  %v33_v22 = vld [vmem:[%s406_s1 + $0x70] sm:$0xff]  ;;  %v34_v23 = vld [vmem:[%s406_s1 + $0x78] sm:$0xff]  ;;  %v16_v25 = vld [vmem:[%s405_s0] sm:$0xff] }
   0xa   :  { %v42_v24 = vpack.c.bf16 %v34_v23, %v33_v22  ;;  %v17_v26 = vld [vmem:[%s405_s0 + $0x8] sm:$0xff]  ;;  %v98_v40 = vsub.s32 0, %v97_v39  ;;  %v118_v52 = vld [vmem:[%s407_s2] sm:$0xff]  ;;  %s315_s2 = smov [#allocation2]  }
   0xb   :  { %v18_v27 = vpack.c.bf16 %v17_v26, %v16_v25  ;;  %273 = vmatprep.subr.mxu1 %v118_v52  ;;  %s233_s21 = sshll.u32 %s315_s2, 4  ;;  %s234_s21 = int_to_ptr.vmem [resolvable:$true] %s233_s21 }
   0xc   :  { %258 = vmatpush3.bf16.msra.mxu0 %v37_v9  ;;  %274 = vmatpush3.xpose.msra.mxu1 %v118_v52  ;;  %s289_s22 = scalar_lea.vmem %s234_s21, 16  ;;  %s293_s23 = scalar_lea.vmem %s234_s21, 32 }
   0xd   :  { %259 = vmatprep.subr.bf16.mxu0 %v313_v3  ;;  %p290_p0 = scmp.ne.s32.totalorder %s234_s21, %s289_s22  ;;  %p294_p1 = scmp.lt.s32.totalorder %s234_s21, %s234_s21 }
   0xe   :  { %p295_p2 = scmp.lt.s32.totalorder %s293_s23, %s289_s22 }
  0x10   :  { %260 = vmatpush3.bf16.msra.mxu0 %v38_v12  ;;  %p296_p3 = por %p295_p2, %p294_p1 }
  0x11   :  { %261 = vmatprep.subr.bf16.mxu0 %v313_v3 }
  0x12   :  { %p297_p4 = pnand %p296_p3, %p290_p0 }
  0x14   :  { %262 = vmatpush3.bf16.msra.mxu0 %v39_v15 }
  0x15   :  { %263 = vmatprep.subr.bf16.mxu0 %v313_v3 }
  0x18   :  { %264 = vmatpush3.bf16.msra.mxu0 %v40_v18 }
  0x19   :  { %265 = vmatprep.subr.bf16.mxu0 %v313_v3 }
  0x1c   :  { %266 = vmatpush3.bf16.msra.mxu0 %v41_v21 }
  0x1d   :  { %267 = vmatprep.subr.bf16.mxu0 %v313_v3 }
  0x20   :  { %268 = vmatpush3.bf16.msra.mxu0 %v42_v24 }
  0x23   :  { %270 = vmatmul.mubr.bf16.vlgmr.msra.gmra.mrb[0].mxu0 %v18_v27 }
  0xf6   :  { %v77_v28 = vpop.f32.mrb[0].mxu0 }
  0xf7   :  { %v271_v29 = vpop.f32.mrb[1].mxu0  ;;  %v84_v30 = vmul.f32 %v77_v28, %v77_v28 }
  0xf8   :  { %v80_v31 = vpop.f32.mrb[2].mxu0 }
  0xf9   :  { %86 = vadd.xlane.f32.xlu0 %v84_v30  ;;  %v272_v32 = vpop.f32.mrb[3].mxu0  ;;  %v85_v33 = vmul.f32 %v80_v31, %v80_v31 }
  0xfd   :  { %88 = vadd.xlane.f32.xlu0 %v85_v33 }
 0x186   :  { %v87_v34 = vpop.xlane.xlu0 %86 }
 0x187   :  { %v90_v35 = vmax.f32 %v87_v34, 1e-12 }
 0x189   :  { %281 = vrsqrt.f32 %v90_v35 }
 0x18a   :  { %v89_v36 = vpop.xlane.xlu0 %88 }
 0x18b   :  { %v91_v38 = vmax.f32 %v89_v36, 1e-12 }
 0x18d   :  { %283 = vrsqrt.f32 %v91_v38 }
 0x193   :  { %v282_v41 = vpop.eup %281 }
 0x194   :  { %v94_v42 = vmul.f32 %v282_v41, %v77_v28 }
 0x196   :  { %v99_v43 = vrot.slane %v94_v42, %v98_v40 }
 0x197   :  { %v284_v44 = vpop.eup %283 }
 0x198   :  { %v100_v45 = vsub.f32 %v94_v42, %v99_v43  ;;  %v95_v46 = vmul.f32 %v284_v44, %v80_v31 }
 0x19a   :  { %v102_v47 = vmul.f32 %v100_v45, %v100_v45  ;;  %v101_v48 = vsub.f32 %v95_v46, %v99_v43 }
 0x19c   :  { %v105_v49 = vsel %vm104_vm1, %v102_v47, 0.0  ;;  %v103_v50 = vmul.f32 %v101_v48, %v101_v48 }
 0x19d   :  { %106 = vadd.xlane.f32.xlu1 %v105_v49 }
 0x19e   :  { %v109_v51 = vsel %vm108_vm2, %v103_v50, 0.0 }
 0x1a1   :  { %110 = vadd.xlane.f32.xlu1 %v109_v51 }
 0x22a   :  { %v107_v53 = vpop.xlane.xlu1 %106 }
 0x22b   :  { %v112_v54 = vmax.f32 %v107_v53, 1e-12 }
 0x22d   :  { %285 = vrsqrt.f32 %v112_v54 }
 0x22e   :  { %v111_v55 = vpop.xlane.xlu1 %110 }
 0x22f   :  { %v113_v56 = vmax.f32 %v111_v55, 1e-12 }
 0x231   :  { %287 = vrsqrt.f32 %v113_v56 }
 0x237   :  { %v286_v57 = vpop.eup %285 }
 0x238   :  { %v116_v58 = vmul.f32 %v286_v57, %v100_v45 }
 0x23a   :  { %v122_v61 = vrot.slane %v116_v58, 1 }
 0x23b   :  { %v288_v59 = vpop.eup %287 }
 0x23c   :  { %v117_v60 = vmul.f32 %v288_v59, %v101_v48 }
 0x23e   :  { %v123_v62 = vrot.slane %v117_v60, 1 }
 0x240   :  { %v124_v63 = vsel %vm121_vm3, %v122_v61, %v123_v62 }
 0x241   :  { %275 = vmatprep.mubr.f32.mxu1 %v124_v63 }
 0x242   :  { %276 = vmatmul.mubr.f32.vlgmr.msra.gmra.mrb[0].mxu1 %v123_v62 }
 0x315   :  { %v277_v0 = vpop.f32.mrb[0].mxu1 }
 0x316   :  { %v203_v1 = vsub.f32 1.0, %v277_v0  ;;  %v193_v2 = vpop.f32.mrb[1].mxu1 }
 0x317   :  { %v202_v3 = vsub.f32 1.0, %v193_v2 }
 0x318   :  { %v208_v4 = vrot.slane %v203_v1, 1 }
 0x319   :  { %v207_v5 = vrot.slane %v202_v3, 1 }
 0x31a   :  { %v215_v7 = vsel %vm214_vm4, %v208_v4, 0.0 }
 0x31b   :  { %v209_v6 = vsel %vm121_vm3, %v207_v5, %v208_v4 }
 0x31c   :  { %v213_v8 = vsel %vm212_vm5, %v209_v6, 0.0 }
 0x31d   :  { %v216_v9 = vadd.f32 %v215_v7, %v213_v8 }
 0x31f   :  { %v217_v10 = vrot.slane %v216_v9, 4 }
 0x321   :  { %v218_v11 = vadd.f32 %v217_v10, %v216_v9 }
 0x323   :  { %v219_v12 = vrot.slane %v218_v11, 2 }
 0x325   :  { %v220_v13 = vadd.f32 %v219_v12, %v218_v11 }
 0x327   :  { %v221_v14 = vrot.slane %v220_v13, 1 }
 0x329   :  { %v222_v15 = vadd.f32 %v221_v14, %v220_v13 }
 0x32b   :  { %v223_v16 = vmul.f32 0.083333336, %v222_v15 }
 0x32d   :  { %v224_v17 = vadd.f32 %v223_v16, %v202_v3 }
 0x32f   :  { %226 = vst.msk [vmem:[#allocation2] sm:$0x1] %vm225_vm6, %v224_v17 }
 0x330   :  { %300 = shalt.err (!%p297_p4)
}
 0x331   :  { %s301_s26 = scalar_lea.hbm %s408_s3, 16 }
 0x332   :  { %p302_p5 = scmp.ne.s32.totalorder %s408_s3, %s301_s26  ;;  %p305_p6 = scmp.lt.u32.totalorder %s301_s26, %s408_s3 }
 0x334   :  { %p307_p7 = pnand %p305_p6, %p302_p5 }
 0x336   :  { %310 = shalt.err (!%p307_p7)
}
 0x337   :  { %236 = dma.vmem_to_hbm [thread:$0]  %s234_s21, 16, %s408_s3, [#allocation3]  }
 0x338   :  { %311 = dma.done.wait [#allocation3], 16  }
 0x339   :  { %312 = vsyncadd [#allocation3], 4294967280 }
 0x33a   :  { %240 = vsyncpa [#allocation3], 1 }

</bundles_post_ra>
